<compile_context>
chip_gen: v5e
topology: v5e:2x2
jax: 0.10.0
libtpu: 0.0.40
codegen_flags: <defaults>
</compile_context>

<pallas_src>
import jax
import jax.numpy as jnp
from jax.experimental import pallas as pl
from jax.experimental.pallas import tpu as pltpu

NUMBER_OF_INPUTS = 128    # synthetic stand-in for gamePlayer.observation_space
HIDDEN1 = 256
HIDDEN2 = 256
HIDDEN3 = 256
NUMBER_OF_OUTPUTS = 32    # synthetic stand-in for gamePlayer.action_space.n
OUT_PADDED = 128          # lane-dense padded output width (>= NUMBER_OF_OUTPUTS)


def mlp_kernel(x_ref,
               w1_ref, b1_ref,
               w2_ref, b2_ref,
               w3_ref, b3_ref,
               w4_ref, b4_ref,
               o_ref):
    # Input arrives f32; cast to bf16 in-kernel (free VPU work under the MXU).
    h = x_ref[...].astype(jnp.bfloat16)
    # Layer 1: Linear + ReLU   (bf16 operands, f32 accumulation)
    h = jnp.dot(h, w1_ref[...], preferred_element_type=jnp.float32)
    h = jnp.maximum(h + b1_ref[...], 0.0)
    # Layer 2: Linear + ReLU
    h = jnp.dot(h.astype(jnp.bfloat16), w2_ref[...],
                preferred_element_type=jnp.float32)
    h = jnp.maximum(h + b2_ref[...], 0.0)
    # Layer 3: Linear + ReLU
    h = jnp.dot(h.astype(jnp.bfloat16), w3_ref[...],
                preferred_element_type=jnp.float32)
    h = jnp.maximum(h + b3_ref[...], 0.0)
    # Layer 4: Linear + ReLU (the module applies ReLU to the final layer too).
    # w4/b4 are zero-padded to 128 output lanes -> unmasked, lane-dense store.
    h = jnp.dot(h.astype(jnp.bfloat16), w4_ref[...],
                preferred_element_type=jnp.float32)
    h = jnp.maximum(h + b4_ref[...], 0.0)
    o_ref[...] = h.astype(o_ref.dtype)


def neural_network_forward(x, params):
    """x: [B, NUMBER_OF_INPUTS] float.

    Returns the lane-dense padded logits [B_pad, OUT_PADDED] (f32).  Only the
    first NUMBER_OF_OUTPUTS columns / first B rows are meaningful; index them
    at the consumer (avoids a standalone HBM trimming pass here).
    """
    B = x.shape[0]
    B_pad = ((B + 7) // 8) * 8  # pad batch to a sublane multiple
    if B_pad != B:
        x = jnp.pad(x, ((0, B_pad - B), (0, 0)))
    x = x.astype(jnp.float32)

    args = (
        x,
        params["w1"], params["b1"],
        params["w2"], params["b2"],
        params["w3"], params["b3"],
        params["w4"], params["b4"],
    )

    # Single grid step: every array is one full-extent VMEM block.
    spec = lambda shape: pl.BlockSpec(shape, lambda i: (0, 0))
    in_specs = [
        spec((B_pad, NUMBER_OF_INPUTS)),
        spec((NUMBER_OF_INPUTS, HIDDEN1)), spec((1, HIDDEN1)),
        spec((HIDDEN1, HIDDEN2)),          spec((1, HIDDEN2)),
        spec((HIDDEN2, HIDDEN3)),          spec((1, HIDDEN3)),
        spec((HIDDEN3, OUT_PADDED)),       spec((1, OUT_PADDED)),
    ]
    out_spec = spec((B_pad, OUT_PADDED))

    flops = 2 * B_pad * (NUMBER_OF_INPUTS * HIDDEN1
                         + HIDDEN1 * HIDDEN2
                         + HIDDEN2 * HIDDEN3
                         + HIDDEN3 * OUT_PADDED)
    weight_bytes = 2 * (NUMBER_OF_INPUTS * HIDDEN1 + HIDDEN1 * HIDDEN2
                        + HIDDEN2 * HIDDEN3 + HIDDEN3 * OUT_PADDED)
    bias_bytes = 4 * (HIDDEN1 + HIDDEN2 + HIDDEN3 + OUT_PADDED)
    io_bytes = 4 * B_pad * NUMBER_OF_INPUTS + 4 * B_pad * OUT_PADDED
    cost = pl.CostEstimate(flops=flops, transcendentals=0,
                           bytes_accessed=weight_bytes + bias_bytes + io_bytes)

    return pl.pallas_call(
        mlp_kernel,
        out_shape=jax.ShapeDtypeStruct((B_pad, OUT_PADDED), jnp.float32),
        grid=(1,),
        in_specs=in_specs,
        out_specs=out_spec,
        compiler_params=pltpu.CompilerParams(
            dimension_semantics=("arbitrary",)),
        cost_estimate=cost,
    )(*args)


def init_params(key):
    """Deterministic init mimicking nn.Linear default (uniform ±1/sqrt(fan_in)).

    Weights are stored [F_in, F_out] (transposed vs. PyTorch's [out, in]) and
    cast to bf16; biases kept as (1, F_out) f32.  The final layer is zero-padded
    from NUMBER_OF_OUTPUTS to OUT_PADDED output columns.
    Note: bf16 weight storage deviates slightly from the f32 PyTorch module;
    acceptable for this model, verified against the bf16 reference below.
    """
    dims = [NUMBER_OF_INPUTS, HIDDEN1, HIDDEN2, HIDDEN3, NUMBER_OF_OUTPUTS]
    params = {}
    keys = jax.random.split(key, 2 * (len(dims) - 1))
    for i in range(len(dims) - 1):
        fan_in, fan_out = dims[i], dims[i + 1]
        bound = 1.0 / (fan_in ** 0.5)
        w = jax.random.uniform(keys[2 * i], (fan_in, fan_out),
                               jnp.float32, -bound, bound)
        b = jax.random.uniform(keys[2 * i + 1], (1, fan_out),
                               jnp.float32, -bound, bound)
        if i == len(dims) - 2:  # pad last layer to lane-dense width
            w = jnp.pad(w, ((0, 0), (0, OUT_PADDED - fan_out)))
            b = jnp.pad(b, ((0, 0), (0, OUT_PADDED - fan_out)))
        params[f"w{i + 1}"] = w.astype(jnp.bfloat16)
        params[f"b{i + 1}"] = b  # f32
    return params


def reference_forward(x, params):
    """Pure-JAX reference using the same bf16 operands / f32 accumulation."""
    h = x.astype(jnp.bfloat16)
    for i in range(1, 5):
        h = jnp.dot(h, params[f"w{i}"], preferred_element_type=jnp.float32)
        h = jnp.maximum(h + params[f"b{i}"], 0.0)
        if i < 4:
            h = h.astype(jnp.bfloat16)
    return h[:, :NUMBER_OF_OUTPUTS]


if __name__ == "__main__":
    BATCH = 32  # small RL-style inference batch
    key = jax.random.PRNGKey(0)
    kx, kp = jax.random.split(key)
    x = jax.random.normal(kx, (BATCH, NUMBER_OF_INPUTS), jnp.float32)
    params = init_params(kp)

    out_padded = neural_network_forward(x, params)
    out_padded = jax.block_until_ready(out_padded)

    # Consumer-side indexing of the meaningful rows/columns (no extra HBM pass
    # inside the wrapper).
    out = out_padded[:BATCH, :NUMBER_OF_OUTPUTS]

    ref = reference_forward(x, params)
    assert out.shape == (BATCH, NUMBER_OF_OUTPUTS)
    assert jnp.allclose(out, ref, atol=1e-2, rtol=1e-2), "mismatch vs reference"

    print("KERNEL_OK")
</pallas_src>

<mosaic_0001>
module attributes {stable_mosaic.version = 11 : i64} {
  func.func @mlp_kernel(%arg0: i32, %arg1: memref<32x128xf32, #tpu.memory_space<vmem>>, %arg2: memref<128x256xbf16, #tpu.memory_space<vmem>>, %arg3: memref<1x256xf32, #tpu.memory_space<vmem>>, %arg4: memref<256x256xbf16, #tpu.memory_space<vmem>>, %arg5: memref<1x256xf32, #tpu.memory_space<vmem>>, %arg6: memref<256x256xbf16, #tpu.memory_space<vmem>>, %arg7: memref<1x256xf32, #tpu.memory_space<vmem>>, %arg8: memref<256x128xbf16, #tpu.memory_space<vmem>>, %arg9: memref<1x128xf32, #tpu.memory_space<vmem>>, %arg10: memref<32x128xf32, #tpu.memory_space<vmem>>) attributes {dimension_semantics = [#tpu.dimension_semantics<arbitrary>], iteration_bounds = array<i64: 1>, scalar_prefetch = 0 : i64, scratch_operands = 0 : i64, tpu.core_type = #tpu.core_type<tc>, window_params = [{pipeline_mode = #tpu.pipeline_mode<synchronous>, transform_indices = @transform_0, window_bounds = array<i64: 32, 128>}, {pipeline_mode = #tpu.pipeline_mode<synchronous>, transform_indices = @transform_1, window_bounds = array<i64: 128, 256>}, {pipeline_mode = #tpu.pipeline_mode<synchronous>, transform_indices = @transform_2, window_bounds = array<i64: 1, 256>}, {pipeline_mode = #tpu.pipeline_mode<synchronous>, transform_indices = @transform_3, window_bounds = array<i64: 256, 256>}, {pipeline_mode = #tpu.pipeline_mode<synchronous>, transform_indices = @transform_4, window_bounds = array<i64: 1, 256>}, {pipeline_mode = #tpu.pipeline_mode<synchronous>, transform_indices = @transform_5, window_bounds = array<i64: 256, 256>}, {pipeline_mode = #tpu.pipeline_mode<synchronous>, transform_indices = @transform_6, window_bounds = array<i64: 1, 256>}, {pipeline_mode = #tpu.pipeline_mode<synchronous>, transform_indices = @transform_7, window_bounds = array<i64: 256, 128>}, {pipeline_mode = #tpu.pipeline_mode<synchronous>, transform_indices = @transform_8, window_bounds = array<i64: 1, 128>}, {pipeline_mode = #tpu.pipeline_mode<synchronous>, transform_indices = @transform_9, window_bounds = array<i64: 32, 128>}]} {
    %c0 = arith.constant 0 : index
    %c0_0 = arith.constant 0 : index
    %0 = vector.load %arg1[%c0, %c0_0] : memref<32x128xf32, #tpu.memory_space<vmem>>, vector<32x128xf32>
    %1 = arith.truncf %0 : vector<32x128xf32> to vector<32x128xbf16>
    %c0_1 = arith.constant 0 : index
    %c0_2 = arith.constant 0 : index
    %2 = vector.load %arg2[%c0_1, %c0_2] : memref<128x256xbf16, #tpu.memory_space<vmem>>, vector<128x256xbf16>
    %cst = arith.constant dense<0.000000e+00> : vector<32x256xf32>
    %3 = tpu.matmul %1, %2, %cst {dimension_numbers = #tpu.dot_dimension_numbers<[1], [0], [0], [1], [0, 0, 1, 1], [], []>} : vector<32x128xbf16>, vector<128x256xbf16>, vector<32x256xf32> -> vector<32x256xf32>
    %c0_3 = arith.constant 0 : index
    %c0_4 = arith.constant 0 : index
    %4 = vector.load %arg3[%c0_3, %c0_4] : memref<1x256xf32, #tpu.memory_space<vmem>>, vector<1x256xf32>
    %5 = vector.broadcast %4 : vector<1x256xf32> to vector<32x256xf32>
    %6 = arith.addf %3, %5 : vector<32x256xf32>
    %cst_5 = arith.constant 0.000000e+00 : f32
    %7 = vector.broadcast %cst_5 : f32 to vector<32x256xf32>
    %8 = arith.maximumf %6, %7 : vector<32x256xf32>
    %9 = arith.truncf %8 : vector<32x256xf32> to vector<32x256xbf16>
    %c0_6 = arith.constant 0 : index
    %c0_7 = arith.constant 0 : index
    %10 = vector.load %arg4[%c0_6, %c0_7] : memref<256x256xbf16, #tpu.memory_space<vmem>>, vector<256x256xbf16>
    %cst_8 = arith.constant dense<0.000000e+00> : vector<32x256xf32>
    %11 = tpu.matmul %9, %10, %cst_8 {dimension_numbers = #tpu.dot_dimension_numbers<[1], [0], [0], [1], [0, 0, 1, 1], [], []>} : vector<32x256xbf16>, vector<256x256xbf16>, vector<32x256xf32> -> vector<32x256xf32>
    %c0_9 = arith.constant 0 : index
    %c0_10 = arith.constant 0 : index
    %12 = vector.load %arg5[%c0_9, %c0_10] : memref<1x256xf32, #tpu.memory_space<vmem>>, vector<1x256xf32>
    %13 = vector.broadcast %12 : vector<1x256xf32> to vector<32x256xf32>
    %14 = arith.addf %11, %13 : vector<32x256xf32>
    %cst_11 = arith.constant 0.000000e+00 : f32
    %15 = vector.broadcast %cst_11 : f32 to vector<32x256xf32>
    %16 = arith.maximumf %14, %15 : vector<32x256xf32>
    %17 = arith.truncf %16 : vector<32x256xf32> to vector<32x256xbf16>
    %c0_12 = arith.constant 0 : index
    %c0_13 = arith.constant 0 : index
    %18 = vector.load %arg6[%c0_12, %c0_13] : memref<256x256xbf16, #tpu.memory_space<vmem>>, vector<256x256xbf16>
    %cst_14 = arith.constant dense<0.000000e+00> : vector<32x256xf32>
    %19 = tpu.matmul %17, %18, %cst_14 {dimension_numbers = #tpu.dot_dimension_numbers<[1], [0], [0], [1], [0, 0, 1, 1], [], []>} : vector<32x256xbf16>, vector<256x256xbf16>, vector<32x256xf32> -> vector<32x256xf32>
    %c0_15 = arith.constant 0 : index
    %c0_16 = arith.constant 0 : index
    %20 = vector.load %arg7[%c0_15, %c0_16] : memref<1x256xf32, #tpu.memory_space<vmem>>, vector<1x256xf32>
    %21 = vector.broadcast %20 : vector<1x256xf32> to vector<32x256xf32>
    %22 = arith.addf %19, %21 : vector<32x256xf32>
    %cst_17 = arith.constant 0.000000e+00 : f32
    %23 = vector.broadcast %cst_17 : f32 to vector<32x256xf32>
    %24 = arith.maximumf %22, %23 : vector<32x256xf32>
    %25 = arith.truncf %24 : vector<32x256xf32> to vector<32x256xbf16>
    %c0_18 = arith.constant 0 : index
    %c0_19 = arith.constant 0 : index
    %26 = vector.load %arg8[%c0_18, %c0_19] : memref<256x128xbf16, #tpu.memory_space<vmem>>, vector<256x128xbf16>
    %cst_20 = arith.constant dense<0.000000e+00> : vector<32x128xf32>
    %27 = tpu.matmul %25, %26, %cst_20 {dimension_numbers = #tpu.dot_dimension_numbers<[1], [0], [0], [1], [0, 0, 1, 1], [], []>} : vector<32x256xbf16>, vector<256x128xbf16>, vector<32x128xf32> -> vector<32x128xf32>
    %c0_21 = arith.constant 0 : index
    %c0_22 = arith.constant 0 : index
    %28 = vector.load %arg9[%c0_21, %c0_22] : memref<1x128xf32, #tpu.memory_space<vmem>>, vector<1x128xf32>
    %29 = vector.broadcast %28 : vector<1x128xf32> to vector<32x128xf32>
    %30 = arith.addf %27, %29 : vector<32x128xf32>
    %cst_23 = arith.constant 0.000000e+00 : f32
    %31 = vector.broadcast %cst_23 : f32 to vector<32x128xf32>
    %32 = arith.maximumf %30, %31 : vector<32x128xf32>
    %c0_24 = arith.constant 0 : index
    %c0_25 = arith.constant 0 : index
    %33 = vector.load %arg10[%c0_24, %c0_25] : memref<32x128xf32, #tpu.memory_space<vmem>>, vector<32x128xf32>
    tpu.vector_store %arg10[%c0_24, %c0_25], %32 {strides = array<i32>} : memref<32x128xf32, #tpu.memory_space<vmem>>, vector<32x128xf32>,
    return
  }
  func.func @transform_0(%arg0: i32) -> (i32, i32) {
    %c0_i32 = arith.constant 0 : i32
    %c0_i32_0 = arith.constant 0 : i32
    %c0_i32_1 = arith.constant 0 : i32
    return %c0_i32, %c0_i32_0 : i32, i32
  }
  func.func @transform_1(%arg0: i32) -> (i32, i32) {
    %c0_i32 = arith.constant 0 : i32
    %c0_i32_0 = arith.constant 0 : i32
    %c0_i32_1 = arith.constant 0 : i32
    return %c0_i32, %c0_i32_0 : i32, i32
  }
  func.func @transform_2(%arg0: i32) -> (i32, i32) {
    %c0_i32 = arith.constant 0 : i32
    %c0_i32_0 = arith.constant 0 : i32
    %c0_i32_1 = arith.constant 0 : i32
    return %c0_i32, %c0_i32_0 : i32, i32
  }
  func.func @transform_3(%arg0: i32) -> (i32, i32) {
    %c0_i32 = arith.constant 0 : i32
    %c0_i32_0 = arith.constant 0 : i32
    %c0_i32_1 = arith.constant 0 : i32
    return %c0_i32, %c0_i32_0 : i32, i32
  }
  func.func @transform_4(%arg0: i32) -> (i32, i32) {
    %c0_i32 = arith.constant 0 : i32
    %c0_i32_0 = arith.constant 0 : i32
    %c0_i32_1 = arith.constant 0 : i32
    return %c0_i32, %c0_i32_0 : i32, i32
  }
  func.func @transform_5(%arg0: i32) -> (i32, i32) {
    %c0_i32 = arith.constant 0 : i32
    %c0_i32_0 = arith.constant 0 : i32
    %c0_i32_1 = arith.constant 0 : i32
    return %c0_i32, %c0_i32_0 : i32, i32
  }
  func.func @transform_6(%arg0: i32) -> (i32, i32) {
    %c0_i32 = arith.constant 0 : i32
    %c0_i32_0 = arith.constant 0 : i32
    %c0_i32_1 = arith.constant 0 : i32
    return %c0_i32, %c0_i32_0 : i32, i32
  }
  func.func @transform_7(%arg0: i32) -> (i32, i32) {
    %c0_i32 = arith.constant 0 : i32
    %c0_i32_0 = arith.constant 0 : i32
    %c0_i32_1 = arith.constant 0 : i32
    return %c0_i32, %c0_i32_0 : i32, i32
  }
  func.func @transform_8(%arg0: i32) -> (i32, i32) {
    %c0_i32 = arith.constant 0 : i32
    %c0_i32_0 = arith.constant 0 : i32
    %c0_i32_1 = arith.constant 0 : i32
    return %c0_i32, %c0_i32_0 : i32, i32
  }
  func.func @transform_9(%arg0: i32) -> (i32, i32) {
    %c0_i32 = arith.constant 0 : i32
    %c0_i32_0 = arith.constant 0 : i32
    %c0_i32_1 = arith.constant 0 : i32
    return %c0_i32, %c0_i32_0 : i32, i32
  }
}

</mosaic_0001>

<bundles_post_ra>
// kernel: tpu_custom_call.1
= control target key start
LH: loop header
LB: loop body
LE: loop exit
PB: predicated region body
PF: predicated region fallthrough
CT: control target
= control target key end

     0   :  { %14 = vsyncpa [#allocation3], 0  ;;  %s1837_s0 = inlined_call_operand.hbm [shape: f32[32,128], index: 0, kind: input, shape index: {}]   ;;  %s1838_s1 = inlined_call_operand.hbm [shape: bf16[128,256], index: 1, kind: input, shape index: {}]   ;;  %s1839_s2 = inlined_call_operand.hbm [shape: f32[1,256], index: 2, kind: input, shape index: {}]   ;;  %s1840_s3 = inlined_call_operand.hbm [shape: bf16[256,256], index: 3, kind: input, shape index: {}]   ;;  %s1841_s4 = inlined_call_operand.vmem [shape: f32[1,256], index: 4, kind: input, shape index: {}]   ;;  %s1842_s5 = inlined_call_operand.hbm [shape: bf16[256,256], index: 5, kind: input, shape index: {}]   ;;  %s1843_s6 = inlined_call_operand.vmem [shape: f32[1,256], index: 6, kind: input, shape index: {}]   ;;  %s1844_s7 = inlined_call_operand.hbm [shape: bf16[256,128], index: 7, kind: input, shape index: {}]   ;;  %s1845_s8 = inlined_call_operand.vmem [shape: f32[1,128], index: 8, kind: input, shape index: {}]   ;;  %s1846_s9 = inlined_call_operand.hbm [shape: f32[32,128], index: 9, kind: output, shape index: {}]  }
   0x1   :  { %15 = vsyncpa [#allocation6], 0 }
   0x2   :  { %16 = vsyncpa [#allocation9], 0 }
   0x3   :  { %17 = vsyncpa [#allocation12], 0 }
   0x4   :  { %18 = vsyncpa [#allocation4], 0  ;;  %s36_s11 = sshll.u32 %s1838_s1, 4  ;;  %s1725_s12 = smov [#allocation5]   ;;  %s37_s11 = int_to_ptr.hbm [resolvable:$true] %s36_s11 }
   0x5   :  { %s38_s13 = sshll.u32 %s1725_s12, 4  ;;  %s60_s16 = sshll.u32 %s1840_s3, 4  ;;  %s39_s13 = int_to_ptr.vmem [resolvable:$true] %s38_s13  ;;  %s61_s16 = int_to_ptr.hbm [resolvable:$true] %s60_s16 }
   0x6   :  { %s1726_s17 = smov 128   ;;  %s1727_s18 = smov 8  }
   0x7   :  { %44 = dma.hbm_to_vmem [thread:$0]  %s37_s11, 2048, %s39_s13, [#allocation6], %s1726_s17, %s1726_s17, %s1727_s18  }
   0x8   :  { %s1728_s19 = smov [#allocation8]   ;;  %s23_s1 = sshll.u32 %s1837_s0, 4  ;;  %s24_s1 = int_to_ptr.hbm [resolvable:$true] %s23_s1 }
   0x9   :  { %s62_s20 = sshll.u32 %s1728_s19, 4  ;;  %s50_s24 = sshll.u32 %s1839_s2, 4  ;;  %s63_s20 = int_to_ptr.vmem [resolvable:$true] %s62_s20  ;;  %s51_s24 = int_to_ptr.hbm [resolvable:$true] %s50_s24 }
   0xa   :  { %68 = dma.hbm_to_vmem [thread:$0]  %s61_s16, 4096, %s63_s20, [#allocation9], %s1726_s17, %s1726_s17, %s1727_s18  }
   0xb   :  { %s1729_s25 = smov [#allocation2]   ;;  %s1730_s27 = smov [#allocation7]  }
   0xc   :  { %s25_s26 = sshll.u32 %s1729_s25, 4  ;;  %s52_s0 = sshll.u32 %s1730_s27, 4  ;;  %s26_s26 = int_to_ptr.vmem [resolvable:$true] %s25_s26  ;;  %s53_s0 = int_to_ptr.vmem [resolvable:$true] %s52_s0 }
   0xd   :  { %31 = dma.hbm_to_vmem [thread:$0]  %s24_s1, 512, %s26_s26, [#allocation3], %s1726_s17, %s1726_s17, %s1727_s18  }
   0xe   :  { %s75_s30 = sshll.u32 %s1842_s5, 4  ;;  %s90_s2 = sshll.u32 %s1844_s7, 4  ;;  %s76_s30 = int_to_ptr.hbm [resolvable:$true] %s75_s30  ;;  %s91_s2 = int_to_ptr.hbm [resolvable:$true] %s90_s2 }
   0xf   :  { %55 = dma.hbm_to_vmem [thread:$0]  %s51_s24, 32, %s53_s0, [#allocation6]  }
  0x10   :  { %s1731_s12 = smov [#allocation10]   ;;  %s1732_s14 = smov [#allocation11]  }
  0x11   :  { %s77_s13 = sshll.u32 %s1731_s12, 4  ;;  %s92_s15 = sshll.u32 %s1732_s14, 4  ;;  %s78_s13 = int_to_ptr.vmem [resolvable:$true] %s77_s13  ;;  %s93_s15 = int_to_ptr.vmem [resolvable:$true] %s92_s15 }
  0x12   :  { %83 = dma.hbm_to_vmem [thread:$0]  %s76_s30, 4096, %s78_s13, [#allocation9], %s1726_s17, %s1726_s17, %s1727_s18  }
  0x13   :  { %s1733_s16 = smov 64   ;;  %s1734_s5 = smov 4  }
  0x14   :  { %98 = dma.hbm_to_vmem [thread:$0]  %s91_s2, 2048, %s93_s15, [#allocation12], %s1733_s16, %s1733_s16, %s1734_s5  }
  0x15   :  { %1715 = dma.done.wait [#allocation3], 512  }
  0x16   :  { %1716 = vsyncadd [#allocation3], 4294966784 }
  0x17   :  { %1717 = dma.done.wait [#allocation6], 2080  }
  0x18   :  { %1718 = vsyncadd [#allocation6], 4294965216 }
  0x19   :  { %1719 = dma.done.wait [#allocation9], 8192  }
  0x1a   :  { %1720 = vsyncadd [#allocation9], 4294959104 }
  0x1b   :  { %1721 = dma.done.wait [#allocation12], 2048  }
  0x1c   :  { %1722 = vsyncadd [#allocation12], 4294965248  ;;  %v1113_v0 = vld [vmem:[#allocation5 + $0x70] sm:$0xf]  ;;  %v1454_v1 = vld [vmem:[#allocation5 + $0x74] sm:$0xf0] }
  0x1d   :  { %v1453_v2 = vld [vmem:[#allocation5 + $0x74] sm:$0xf]  ;;  %v1114_v3 = vor.u32 %v1454_v1, %v1113_v0  ;;  %v1115_v4 = vld [vmem:[#allocation5 + $0x78] sm:$0xf0]  ;;  %v1105_v5 = vld [vmem:[#allocation5 + $0x60] sm:$0xf] }
  0x1e   :  { %v1452_v6 = vld [vmem:[#allocation5 + $0x64] sm:$0xf0]  ;;  %v1118_v7 = vor.u32 %v1453_v2, %v1115_v4  ;;  %v1451_v8 = vld [vmem:[#allocation5 + $0x64] sm:$0xf]  ;;  %v1107_v9 = vld [vmem:[#allocation5 + $0x68] sm:$0xf0] }
  0x1f   :  { %233 = vmatpush.bf16.msra.mxu0 %v1114_v3  ;;  %v1106_v10 = vor.u32 %v1452_v6, %v1105_v5  ;;  %v1110_v11 = vor.u32 %v1451_v8, %v1107_v9  ;;  %v1097_v12 = vld [vmem:[#allocation5 + $0x50] sm:$0xf]  ;;  %v1450_v13 = vld [vmem:[#allocation5 + $0x54] sm:$0xf0]  ;;  %v1449_v14 = vld [vmem:[#allocation5 + $0x54] sm:$0xf] }
  0x20   :  { %252 = vmatpush.bf16.msra.mxu1 %v1118_v7  ;;  %v1099_v15 = vld [vmem:[#allocation5 + $0x58] sm:$0xf0]  ;;  %v1098_v16 = vor.u32 %v1450_v13, %v1097_v12  ;;  %v1089_v18 = vld [vmem:[#allocation5 + $0x40] sm:$0xf]  ;;  %v1448_v19 = vld [vmem:[#allocation5 + $0x44] sm:$0xf0] }
  0x21   :  { %v1102_v17 = vor.u32 %v1449_v14, %v1099_v15  ;;  %v1447_v20 = vld [vmem:[#allocation5 + $0x44] sm:$0xf]  ;;  %v1091_v21 = vld [vmem:[#allocation5 + $0x48] sm:$0xf0]  ;;  %v1090_v22 = vor.u32 %v1448_v19, %v1089_v18  ;;  %v1081_v24 = vld [vmem:[#allocation5 + $0x30] sm:$0xf] }
  0x22   :  { %v1094_v23 = vor.u32 %v1447_v20, %v1091_v21  ;;  %v1446_v25 = vld [vmem:[#allocation5 + $0x34] sm:$0xf0]  ;;  %v1445_v26 = vld [vmem:[#allocation5 + $0x34] sm:$0xf]  ;;  %v1083_v27 = vld [vmem:[#allocation5 + $0x38] sm:$0xf0] }
  0x23   :  { %234 = vmatpush.bf16.msra.mxu0 %v1106_v10  ;;  %v1082_v28 = vor.u32 %v1446_v25, %v1081_v24  ;;  %v1086_v29 = vor.u32 %v1445_v26, %v1083_v27  ;;  %v1073_v30 = vld [vmem:[#allocation5 + $0x20] sm:$0xf]  ;;  %v1444_v31 = vld [vmem:[#allocation5 + $0x24] sm:$0xf0]  ;;  %v1443_v32 = vld [vmem:[#allocation5 + $0x24] sm:$0xf] }
  0x24   :  { %253 = vmatpush.bf16.msra.mxu1 %v1110_v11  ;;  %v1075_v33 = vld [vmem:[#allocation5 + $0x28] sm:$0xf0]  ;;  %v1074_v34 = vor.u32 %v1444_v31, %v1073_v30  ;;  %v1177_v35 = vld [vmem:[#allocation8 + $0x70] sm:$0xf]  ;;  %v1470_v36 = vld [vmem:[#allocation8 + $0x74] sm:$0xf0] }
  0x25   :  { %v1241_v37 = vld [vmem:[#allocation8 + $0xf0] sm:$0xf]  ;;  %v1078_v38 = vor.u32 %v1443_v32, %v1075_v33  ;;  %v1442_v40 = vld [vmem:[#allocation5 + $0x14] sm:$0xf0]  ;;  %v1178_v41 = vor.u32 %v1470_v36, %v1177_v35  ;;  %v1067_v44 = vld [vmem:[#allocation5 + $0x18] sm:$0xf0] }
  0x26   :  { %v1065_v39 = vld [vmem:[#allocation5 + $0x10] sm:$0xf]  ;;  %v1486_v42 = vld [vmem:[#allocation8 + $0xf4] sm:$0xf0]  ;;  %v1441_v43 = vld [vmem:[#allocation5 + $0x14] sm:$0xf] }
  0x27   :  { %235 = vmatpush.bf16.msra.mxu0 %v1098_v16  ;;  %v1242_v45 = vor.u32 %v1486_v42, %v1241_v37  ;;  %v1169_v46 = vld [vmem:[#allocation8 + $0x60] sm:$0xf]  ;;  %481 = vmatpush.bf16.msra.mxu2 %v1178_v41  ;;  %v1468_v48 = vld [vmem:[#allocation8 + $0x64] sm:$0xf0]  ;;  %v1066_v51 = vor.u32 %v1442_v40, %v1065_v39  ;;  %v1070_v57 = vor.u32 %v1441_v43, %v1067_v44  ;;  %v1469_v58 = vld [vmem:[#allocation8 + $0x74] sm:$0xf] }
  0x28   :  { %254 = vmatpush.bf16.msra.mxu1 %v1102_v17  ;;  %v1057_v47 = vld [vmem:[#allocation5] sm:$0xf]  ;;  %v1484_v50 = vld [vmem:[#allocation8 + $0xe4] sm:$0xf0]  ;;  %v1439_v53 = vld [vmem:[#allocation5 + $0x4] sm:$0xf]  ;;  %v1170_v55 = vor.u32 %v1468_v48, %v1169_v46 }
  0x29   :  { %v1233_v49 = vld [vmem:[#allocation8 + $0xe0] sm:$0xf]  ;;  %v1440_v52 = vld [vmem:[#allocation5 + $0x4] sm:$0xf0]  ;;  %v1059_v54 = vld [vmem:[#allocation5 + $0x8] sm:$0xf0]  ;;  %500 = vmatpush.bf16.msra.mxu3 %v1242_v45 }
  0x2a   :  { %v1234_v56 = vor.u32 %v1484_v50, %v1233_v49  ;;  %v1161_v59 = vld [vmem:[#allocation8 + $0x50] sm:$0xf]  ;;  %v1466_v60 = vld [vmem:[#allocation8 + $0x54] sm:$0xf0]  ;;  %v1179_v61 = vld [vmem:[#allocation8 + $0x78] sm:$0xf0]  ;;  %v1058_v4 = vor.u32 %v1440_v52, %v1057_v47  ;;  %v1062_v9 = vor.u32 %v1439_v53, %v1059_v54 }
  0x2b   :  { %236 = vmatpush.bf16.msra.mxu0 %v1090_v22  ;;  %v1225_v62 = vld [vmem:[#allocation8 + $0xd0] sm:$0xf]  ;;  %v1482_v63 = vld [vmem:[#allocation8 + $0xd4] sm:$0xf0]  ;;  %v125_v0 = vld [vmem:[#allocation2] sm:$0xff]  ;;  %482 = vmatpush.bf16.msra.mxu2 %v1170_v55  ;;  %v1162_v3 = vor.u32 %v1466_v60, %v1161_v59  ;;  %v1182_v10 = vor.u32 %v1469_v58, %v1179_v61  ;;  %s1039_s23 = sshll.u32 %s1846_s9, 4  ;;  %s1040_s23 = int_to_ptr.hbm [resolvable:$true] %s1039_s23 }
  0x2c   :  { %255 = vmatpush.bf16.msra.mxu1 %v1094_v23  ;;  %v1485_v1 = vld [vmem:[#allocation8 + $0xf4] sm:$0xf]  ;;  %v1243_v2 = vld [vmem:[#allocation8 + $0xf8] sm:$0xf0]  ;;  %v126_v5 = vld [vmem:[#allocation2 + $0x8] sm:$0xff]  ;;  %v1226_v6 = vor.u32 %v1482_v63, %v1225_v62 }
  0x2d   :  { %501 = vmatpush.bf16.msra.mxu3 %v1234_v56  ;;  %v1153_v7 = vld [vmem:[#allocation8 + $0x40] sm:$0xf]  ;;  %v1464_v8 = vld [vmem:[#allocation8 + $0x44] sm:$0xf0]  ;;  %v1246_v13 = vor.u32 %v1485_v1, %v1243_v2  ;;  %v1467_v14 = vld [vmem:[#allocation8 + $0x64] sm:$0xf]  ;;  %v129_v16 = vpack.c.bf16 %v126_v5, %v125_v0 }
  0x2e   :  { %v1217_v11 = vld [vmem:[#allocation8 + $0xc0] sm:$0xf]  ;;  %v1480_v12 = vld [vmem:[#allocation8 + $0xc4] sm:$0xf0]  ;;  %v1171_v15 = vld [vmem:[#allocation8 + $0x68] sm:$0xf0]  ;;  %v1154_v19 = vor.u32 %v1464_v8, %v1153_v7 }
  0x2f   :  { %237 = vmatpush.bf16.msra.mxu0 %v1082_v28  ;;  %v1483_v17 = vld [vmem:[#allocation8 + $0xe4] sm:$0xf]  ;;  %v1235_v18 = vld [vmem:[#allocation8 + $0xe8] sm:$0xf0]  ;;  %483 = vmatpush.bf16.msra.mxu2 %v1162_v3  ;;  %v1218_v20 = vor.u32 %v1480_v12, %v1217_v11  ;;  %v1174_v21 = vor.u32 %v1467_v14, %v1171_v15  ;;  %v1465_v23 = vld [vmem:[#allocation8 + $0x54] sm:$0xf] }
  0x30   :  { %256 = vmatpush.bf16.msra.mxu1 %v1086_v29  ;;  %v1238_v22 = vor.u32 %v1483_v17, %v1235_v18  ;;  %v1163_v24 = vld [vmem:[#allocation8 + $0x58] sm:$0xf0]  ;;  %v1481_v25 = vld [vmem:[#allocation8 + $0xd4] sm:$0xf]  ;;  %v1463_v29 = vld [vmem:[#allocation8 + $0x44] sm:$0xf] }
  0x31   :  { %502 = vmatpush.bf16.msra.mxu3 %v1226_v6  ;;  %v1227_v26 = vld [vmem:[#allocation8 + $0xd8] sm:$0xf0]  ;;  %v1166_v27 = vor.u32 %v1465_v23, %v1163_v24  ;;  %v1155_v30 = vld [vmem:[#allocation8 + $0x48] sm:$0xf0]  ;;  %v1479_v31 = vld [vmem:[#allocation8 + $0xc4] sm:$0xf] }
  0x32   :  { %v1230_v28 = vor.u32 %v1481_v25, %v1227_v26  ;;  %v1219_v32 = vld [vmem:[#allocation8 + $0xc8] sm:$0xf0]  ;;  %v1158_v33 = vor.u32 %v1463_v29, %v1155_v30  ;;  %v128_v36 = vld [vmem:[#allocation2 + $0x18] sm:$0xff]  ;;  %v1209_v40 = vld [vmem:[#allocation8 + $0xb0] sm:$0xf] }
  0x33   :  { %238 = vmatpush.bf16.msra.mxu0 %v1074_v34  ;;  %484 = vmatpush.bf16.msra.mxu2 %v1154_v19  ;;  %v1222_v34 = vor.u32 %v1479_v31, %v1219_v32  ;;  %v127_v35 = vld [vmem:[#allocation2 + $0x10] sm:$0xff]  ;;  %v1462_v39 = vld [vmem:[#allocation8 + $0x34] sm:$0xf0]  ;;  %v1147_v44 = vld [vmem:[#allocation8 + $0x38] sm:$0xf0] }
  0x34   :  { %257 = vmatpush.bf16.msra.mxu1 %v1078_v38  ;;  %v130_v37 = vpack.c.bf16 %v128_v36, %v127_v35  ;;  %v1145_v38 = vld [vmem:[#allocation8 + $0x30] sm:$0xf]  ;;  %v1478_v42 = vld [vmem:[#allocation8 + $0xb4] sm:$0xf0]  ;;  %v1461_v43 = vld [vmem:[#allocation8 + $0x34] sm:$0xf] }
  0x35   :  { %503 = vmatpush.bf16.msra.mxu3 %v1218_v20  ;;  %v1146_v41 = vor.u32 %v1462_v39, %v1145_v38  ;;  %v1210_v45 = vor.u32 %v1478_v42, %v1209_v40  ;;  %v1150_v46 = vor.u32 %v1461_v43, %v1147_v44  ;;  %v1477_v47 = vld [vmem:[#allocation8 + $0xb4] sm:$0xf]  ;;  %v1211_v48 = vld [vmem:[#allocation8 + $0xb8] sm:$0xf0]  ;;  %v1137_v50 = vld [vmem:[#allocation8 + $0x20] sm:$0xf] }
  0x36   :  { %v1214_v49 = vor.u32 %v1477_v47, %v1211_v48  ;;  %v1201_v53 = vld [vmem:[#allocation8 + $0xa0] sm:$0xf]  ;;  %v1476_v54 = vld [vmem:[#allocation8 + $0xa4] sm:$0xf0]  ;;  %v1459_v55 = vld [vmem:[#allocation8 + $0x24] sm:$0xf] }
  0x37   :  { %239 = vmatpush.bf16.msra.mxu0 %v1066_v51  ;;  %485 = vmatpush.bf16.msra.mxu2 %v1146_v41  ;;  %v1460_v51 = vld [vmem:[#allocation8 + $0x24] sm:$0xf0]  ;;  %v1202_v56 = vor.u32 %v1476_v54, %v1201_v53  ;;  %v1475_v58 = vld [vmem:[#allocation8 + $0xa4] sm:$0xf]  ;;  %v1203_v59 = vld [vmem:[#allocation8 + $0xa8] sm:$0xf0] }
  0x38   :  { %258 = vmatpush.bf16.msra.mxu1 %v1070_v57  ;;  %v1138_v52 = vor.u32 %v1460_v51, %v1137_v50  ;;  %v1139_v57 = vld [vmem:[#allocation8 + $0x28] sm:$0xf0]  ;;  %v1206_v61 = vor.u32 %v1475_v58, %v1203_v59  ;;  %v1129_v62 = vld [vmem:[#allocation8 + $0x10] sm:$0xf]  ;;  %v1458_v63 = vld [vmem:[#allocation8 + $0x14] sm:$0xf0] }
  0x39   :  { %504 = vmatpush.bf16.msra.mxu3 %v1210_v45  ;;  %v1142_v60 = vor.u32 %v1459_v55, %v1139_v57  ;;  %v1193_v0 = vld [vmem:[#allocation8 + $0x90] sm:$0xf]  ;;  %v1130_v1 = vor.u32 %v1458_v63, %v1129_v62  ;;  %v1474_v2 = vld [vmem:[#allocation8 + $0x94] sm:$0xf0]  ;;  %v1457_v3 = vld [vmem:[#allocation8 + $0x14] sm:$0xf] }
  0x3a   :  { %v1194_v5 = vor.u32 %v1474_v2, %v1193_v0  ;;  %v1473_v7 = vld [vmem:[#allocation8 + $0x94] sm:$0xf]  ;;  %v1195_v8 = vld [vmem:[#allocation8 + $0x98] sm:$0xf0]  ;;  %v1456_v11 = vld [vmem:[#allocation8 + $0x4] sm:$0xf0] }
  0x3b   :  { %240 = vmatpush.bf16.msra.mxu0 %v1058_v4  ;;  %486 = vmatpush.bf16.msra.mxu2 %v1138_v52  ;;  %v1131_v4 = vld [vmem:[#allocation8 + $0x18] sm:$0xf0]  ;;  %v1185_v12 = vld [vmem:[#allocation8 + $0x80] sm:$0xf]  ;;  %v1472_v14 = vld [vmem:[#allocation8 + $0x84] sm:$0xf0] }
  0x3c   :  { %259 = vmatpush.bf16.msra.mxu1 %v1062_v9  ;;  %v1134_v6 = vor.u32 %v1457_v3, %v1131_v4  ;;  %v1198_v9 = vor.u32 %v1473_v7, %v1195_v8  ;;  %v1455_v15 = vld [vmem:[#allocation8 + $0x4] sm:$0xf]  ;;  %v1186_v17 = vor.u32 %v1472_v14, %v1185_v12  ;;  %v1187_v20 = vld [vmem:[#allocation8 + $0x88] sm:$0xf0]  ;;  %v1369_v24 = vld [vmem:[#allocation10 + $0xf0] sm:$0xf] }
  0x3d   :  { %505 = vmatpush.bf16.msra.mxu3 %v1202_v56  ;;  %v1471_v19 = vld [vmem:[#allocation8 + $0x84] sm:$0xf]  ;;  %v1518_v25 = vld [vmem:[#allocation10 + $0xf4] sm:$0xf0]  ;;  %v1517_v26 = vld [vmem:[#allocation10 + $0xf4] sm:$0xf] }
  0x3e   :  { %241 = vmatmul.bf16.vlgmr.msra.gmra.mxu0 %v129_v16  ;;  %v1371_v29 = vld [vmem:[#allocation10 + $0xf8] sm:$0xf0]  ;;  %v1361_v30 = vld [vmem:[#allocation10 + $0xe0] sm:$0xf]  ;;  %v1516_v31 = vld [vmem:[#allocation10 + $0xe4] sm:$0xf0] }
  0x3f   :  { %519 = vmatpush.bf16.msrb.mxu0 %v1182_v10  ;;  %260 = vmatmul.bf16.vlgmr.msra.gmra.mxu1 %v129_v16  ;;  %v1121_v10 = vld [vmem:[#allocation8] sm:$0xf]  ;;  %v1123_v16 = vld [vmem:[#allocation8 + $0x8] sm:$0xf0]  ;;  %v1374_v32 = vor.u32 %v1517_v26, %v1371_v29  ;;  %v1305_v35 = vld [vmem:[#allocation10 + $0x70] sm:$0xf] }
  0x40   :  { %538 = vmatpush.bf16.msrb.mxu1 %v1246_v13  ;;  %487 = vmatpush.bf16.msra.mxu2 %v1130_v1  ;;  %v1122_v13 = vor.u32 %v1456_v11, %v1121_v10  ;;  %v1126_v18 = vor.u32 %v1455_v15, %v1123_v16  ;;  %v1502_v38 = vld [vmem:[#allocation10 + $0x74] sm:$0xf0]  ;;  %v1501_v39 = vld [vmem:[#allocation10 + $0x74] sm:$0xf]  ;;  %v1307_v43 = vld [vmem:[#allocation10 + $0x78] sm:$0xf0] }
  0x41   :  { %506 = vmatpush.bf16.msra.mxu3 %v1194_v5  ;;  %v1306_v42 = vor.u32 %v1502_v38, %v1305_v35  ;;  %v1353_v44 = vld [vmem:[#allocation10 + $0xd0] sm:$0xf]  ;;  %v1310_v45 = vor.u32 %v1501_v39, %v1307_v43  ;;  %v1513_v47 = vld [vmem:[#allocation10 + $0xd4] sm:$0xf]  ;;  %v1355_v48 = vld [vmem:[#allocation10 + $0xd8] sm:$0xf0] }
  0x42   :  { %v1500_v50 = vld [vmem:[#allocation10 + $0x64] sm:$0xf0]  ;;  %v1499_v51 = vld [vmem:[#allocation10 + $0x64] sm:$0xf]  ;;  %v1299_v55 = vld [vmem:[#allocation10 + $0x68] sm:$0xf0]  ;;  %v1358_v58 = vor.u32 %v1513_v47, %v1355_v48 }
  0x43   :  { %520 = vmatpush.bf16.msrb.mxu0 %v1174_v21  ;;  %v1190_v21 = vor.u32 %v1471_v19, %v1187_v20  ;;  %v1302_v59 = vor.u32 %v1499_v51, %v1299_v55  ;;  %v1345_v63 = vld [vmem:[#allocation10 + $0xc0] sm:$0xf]  ;;  %v1498_v0 = vld [vmem:[#allocation10 + $0x54] sm:$0xf0]  ;;  %v1512_v2 = vld [vmem:[#allocation10 + $0xc4] sm:$0xf0] }
  0x44   :  { %539 = vmatpush.bf16.msrb.mxu1 %v1238_v22  ;;  %488 = vmatpush.bf16.msra.mxu2 %v1122_v13  ;;  %v147_v22 = vld [vmem:[#allocation7] sm:$0x3]  ;;  %v1511_v3 = vld [vmem:[#allocation10 + $0xc4] sm:$0xf]  ;;  %v1347_v4 = vld [vmem:[#allocation10 + $0xc8] sm:$0xf0]  ;;  %v1346_v11 = vor.u32 %v1512_v2, %v1345_v63 }
  0x45   :  { %507 = vmatpush.bf16.msra.mxu3 %v1186_v17  ;;  %v1816_v36 = vperm.slane %v147_v22, 0  ;;  %v150_v40 = vperm.slane %v147_v22, 1  ;;  %v1350_v12 = vor.u32 %v1511_v3, %v1347_v4  ;;  %v1291_v29 = vld [vmem:[#allocation10 + $0x58] sm:$0xf0]  ;;  %v1496_v38 = vld [vmem:[#allocation10 + $0x44] sm:$0xf0] }
  0x46   :  { %v1339_v35 = vld [vmem:[#allocation10 + $0xb8] sm:$0xf0]  ;;  %v1495_v39 = vld [vmem:[#allocation10 + $0x44] sm:$0xf]  ;;  %v1329_v43 = vld [vmem:[#allocation10 + $0xa0] sm:$0xf] }
  0x47   :  { %521 = vmatpush.bf16.msrb.mxu0 %v1166_v27  ;;  %v1331_v47 = vld [vmem:[#allocation10 + $0xa8] sm:$0xf0]  ;;  %v1493_v51 = vld [vmem:[#allocation10 + $0x34] sm:$0xf]  ;;  %v1321_v55 = vld [vmem:[#allocation10 + $0x90] sm:$0xf] }
  0x48   :  { %540 = vmatpush.bf16.msrb.mxu1 %v1230_v28  ;;  %v1370_v28 = vor.u32 %v1518_v25, %v1369_v24  ;;  %767 = vmatpush.bf16.msrb.mxu2 %v1306_v42  ;;  %v1491_v63 = vld [vmem:[#allocation10 + $0x24] sm:$0xf]  ;;  %v1313_v3 = vld [vmem:[#allocation10 + $0x80] sm:$0xf]  ;;  %v1504_v4 = vld [vmem:[#allocation10 + $0x84] sm:$0xf0] }
  0x4a   :  { %786 = vmatpush.bf16.msrb.mxu3 %v1370_v28  ;;  %v1497_v28 = vld [vmem:[#allocation10 + $0x54] sm:$0xf] }
  0x4b   :  { %522 = vmatpush.bf16.msrb.mxu0 %v1158_v33  ;;  %v1515_v33 = vld [vmem:[#allocation10 + $0xe4] sm:$0xf] }
  0x4c   :  { %541 = vmatpush.bf16.msrb.mxu1 %v1222_v34  ;;  %v1363_v34 = vld [vmem:[#allocation10 + $0xe8] sm:$0xf0] }
  0x4d   :  { %v1366_v41 = vor.u32 %v1515_v33, %v1363_v34  ;;  %v1509_v33 = vld [vmem:[#allocation10 + $0xb4] sm:$0xf] }
  0x4e   :  { %246 = vmatmul.bf16.gmra.mxu0 %v130_v37 }
  0x4f   :  { %265 = vmatmul.bf16.gmra.mxu1 %v130_v37  ;;  %523 = vmatpush.bf16.msrb.mxu0 %v1150_v46  ;;  %v1362_v37 = vor.u32 %v1516_v31, %v1361_v30  ;;  %v1514_v46 = vld [vmem:[#allocation10 + $0xd4] sm:$0xf0]  ;;  %v1294_v30 = vor.u32 %v1497_v28, %v1291_v29  ;;  %v1337_v31 = vld [vmem:[#allocation10 + $0xb0] sm:$0xf] }
  0x50   :  { %542 = vmatpush.bf16.msrb.mxu1 %v1214_v49  ;;  %v1297_v49 = vld [vmem:[#allocation10 + $0x60] sm:$0xf]  ;;  %v1354_v53 = vor.u32 %v1514_v46, %v1353_v44  ;;  %v1508_v44 = vld [vmem:[#allocation10 + $0xa4] sm:$0xf0]  ;;  %v1534_v29 = vld [vmem:[#allocation11 + $0x78] sm:$0xff] }
  0x51   :  { %787 = vmatpush.bf16.msrb.mxu3 %v1362_v37  ;;  %v1298_v54 = vor.u32 %v1500_v50, %v1297_v49  ;;  %v1281_v37 = vld [vmem:[#allocation10 + $0x40] sm:$0xf]  ;;  %v1330_v46 = vor.u32 %v1508_v44, %v1329_v43  ;;  %v1273_v49 = vld [vmem:[#allocation10 + $0x30] sm:$0xf]  ;;  %v1494_v50 = vld [vmem:[#allocation10 + $0x34] sm:$0xf0] }
  0x53   :  { %524 = vmatpush.bf16.msrb.mxu0 %v1142_v60  ;;  %v1289_v60 = vld [vmem:[#allocation10 + $0x50] sm:$0xf]  ;;  %768 = vmatpush.bf16.msrb.mxu2 %v1298_v54 }
  0x54   :  { %543 = vmatpush.bf16.msrb.mxu1 %v1206_v61  ;;  %v1290_v5 = vor.u32 %v1498_v0, %v1289_v60 }
  0x55   :  { %788 = vmatpush.bf16.msrb.mxu3 %v1354_v53  ;;  %v1275_v53 = vld [vmem:[#allocation10 + $0x38] sm:$0xf0] }
  0x56   :  { %v1278_v54 = vor.u32 %v1493_v51, %v1275_v53 }
  0x57   :  { %525 = vmatpush.bf16.msrb.mxu0 %v1134_v6  ;;  %769 = vmatpush.bf16.msrb.mxu2 %v1290_v5  ;;  %v1503_v5 = vld [vmem:[#allocation10 + $0x84] sm:$0xf] }
  0x58   :  { %544 = vmatpush.bf16.msrb.mxu1 %v1198_v9 }
  0x59   :  { %789 = vmatpush.bf16.msrb.mxu3 %v1346_v11  ;;  %v1489_v11 = vld [vmem:[#allocation10 + $0x14] sm:$0xf] }
  0x5b   :  { %526 = vmatpush.bf16.msrb.mxu0 %v1126_v18 }
  0x5c   :  { %545 = vmatpush.bf16.msrb.mxu1 %v1190_v21 }
  0x5f   :  { %805 = vmatpush.bf16.msra.mxu0 %v1310_v45  ;;  %v1507_v45 = vld [vmem:[#allocation10 + $0xa4] sm:$0xf] }
  0x60   :  { %824 = vmatpush.bf16.msra.mxu1 %v1374_v32  ;;  %v1510_v32 = vld [vmem:[#allocation10 + $0xb4] sm:$0xf0]  ;;  %v1334_v48 = vor.u32 %v1507_v45, %v1331_v47 }
  0x61   :  { %v1338_v34 = vor.u32 %v1510_v32, %v1337_v31 }
  0x63   :  { %806 = vmatpush.bf16.msra.mxu0 %v1302_v59  ;;  %790 = vmatpush.bf16.msrb.mxu3 %v1338_v34  ;;  %v1323_v59 = vld [vmem:[#allocation10 + $0x98] sm:$0xf0] }
  0x64   :  { %825 = vmatpush.bf16.msra.mxu1 %v1366_v41  ;;  %v1283_v41 = vld [vmem:[#allocation10 + $0x48] sm:$0xf0] }
  0x65   :  { %v1286_v42 = vor.u32 %v1495_v39, %v1283_v41 }
  0x67   :  { %807 = vmatpush.bf16.msra.mxu0 %v1294_v30  ;;  %791 = vmatpush.bf16.msrb.mxu3 %v1330_v46  ;;  %v1526_v30 = vld [vmem:[#allocation11 + $0x38] sm:$0xff] }
  0x68   :  { %826 = vmatpush.bf16.msra.mxu1 %v1358_v58 }
  0x6b   :  { %808 = vmatpush.bf16.msra.mxu0 %v1286_v42 }
  0x6c   :  { %827 = vmatpush.bf16.msra.mxu1 %v1350_v12 }
  0x6f   :  { %809 = vmatpush.bf16.msra.mxu0 %v1278_v54 }
  0xbb   :  { %v242_v23 = vpop.f32.mrf.mxu0 }
  0xbc   :  { %v261_v27 = vpop.f32.mrf.mxu1  ;;  %v243_v52 = vadd.f32 %v242_v23, %v1816_v36 }
  0xbd   :  { %v262_v56 = vadd.f32 %v261_v27, %v150_v40 }
  0xbe   :  { %v271_v6 = vmax.f32 %v243_v52, 0.0  ;;  %v1274_v52 = vor.u32 %v1494_v50, %v1273_v49 }
  0xbf   :  { %v272_v8 = vmax.f32 %v262_v56, 0.0  ;;  %v1506_v56 = vld [vmem:[#allocation10 + $0x94] sm:$0xf0] }
  0xc0   :  { %v1322_v58 = vor.u32 %v1506_v56, %v1321_v55 }
  0xc2   :  { %792 = vmatpush.bf16.msrb.mxu3 %v1322_v58 }
  0xc3   :  { %v244_v57 = vpop.f32.mrf.mxu0 }
  0xc4   :  { %v245_v61 = vadd.f32 %v244_v57, %v1816_v36  ;;  %v263_v62 = vpop.f32.mrf.mxu1  ;;  %v1505_v57 = vld [vmem:[#allocation10 + $0x94] sm:$0xf] }
  0xc5   :  { %v264_v1 = vadd.f32 %v263_v62, %v150_v40  ;;  %v1326_v60 = vor.u32 %v1505_v57, %v1323_v59  ;;  %v1492_v62 = vld [vmem:[#allocation10 + $0x24] sm:$0xf0] }
  0xc6   :  { %v273_v7 = vmax.f32 %v245_v61, 0.0  ;;  %v1265_v61 = vld [vmem:[#allocation10 + $0x20] sm:$0xf] }
  0xc7   :  { %v274_v9 = vmax.f32 %v264_v1, 0.0  ;;  %v1266_v0 = vor.u32 %v1492_v62, %v1265_v61  ;;  %v1267_v1 = vld [vmem:[#allocation10 + $0x28] sm:$0xf0] }
  0xc8   :  { %v279_v10 = vpack.c.bf16 %v273_v7, %v271_v6  ;;  %v1270_v2 = vor.u32 %v1491_v63, %v1267_v1  ;;  %v1314_v6 = vor.u32 %v1504_v4, %v1313_v3  ;;  %v1315_v7 = vld [vmem:[#allocation10 + $0x88] sm:$0xf0] }
  0xc9   :  { %v280_v13 = vpack.c.bf16 %v274_v9, %v272_v8  ;;  %v1318_v8 = vor.u32 %v1503_v5, %v1315_v7  ;;  %v1257_v9 = vld [vmem:[#allocation10 + $0x10] sm:$0xf]  ;;  %v1532_v7 = vld [vmem:[#allocation11 + $0x68] sm:$0xff] }
  0xca   :  { %489 = vmatmul.bf16.vlgmr.msra.gmra.mxu2 %v279_v10  ;;  %527 = vmatmul.bf16.vlgmr.msrb.gmra.mxu0 %v279_v10  ;;  %v1490_v10 = vld [vmem:[#allocation10 + $0x14] sm:$0xf0] }
  0xcb   :  { %508 = vmatmul.bf16.vlgmr.msra.gmra.mxu3 %v280_v13  ;;  %546 = vmatmul.bf16.vlgmr.msrb.gmra.mxu1 %v280_v13  ;;  %v247_v14 = vpop.f32.mrf.mxu0  ;;  %v1258_v12 = vor.u32 %v1490_v10, %v1257_v9  ;;  %v1259_v13 = vld [vmem:[#allocation10 + $0x18] sm:$0xf0]  ;;  %v1531_v9 = vld [vmem:[#allocation11 + $0x60] sm:$0xff]  ;;  %v1524_v10 = vld [vmem:[#allocation11 + $0x28] sm:$0xff] }
  0xcc   :  { %v266_v15 = vpop.f32.mrf.mxu1  ;;  %v248_v16 = vadd.f32 %v247_v14, %v1816_v36  ;;  %810 = vmatpush.bf16.msra.mxu0 %v1270_v2  ;;  %793 = vmatpush.bf16.msrb.mxu3 %v1314_v6  ;;  %v1262_v14 = vor.u32 %v1489_v11, %v1259_v13  ;;  %v1530_v11 = vld [vmem:[#allocation11 + $0x58] sm:$0xff]  ;;  %v1529_v13 = vld [vmem:[#allocation11 + $0x50] sm:$0xff] }
  0xcd   :  { %v267_v17 = vadd.f32 %v266_v15, %v150_v40  ;;  %v1249_v15 = vld [vmem:[#allocation10] sm:$0xf] }
  0xce   :  { %v275_v22 = vmax.f32 %v248_v16, 0.0  ;;  %v1488_v16 = vld [vmem:[#allocation10 + $0x4] sm:$0xf0] }
  0xcf   :  { %v276_v24 = vmax.f32 %v267_v17, 0.0  ;;  %v1487_v17 = vld [vmem:[#allocation10 + $0x4] sm:$0xf] }
  0xd0   :  { %811 = vmatpush.bf16.msra.mxu0 %v1262_v14  ;;  %1006 = vmatpush.bf16.msra.mxu3 %v1534_v29  ;;  %v1522_v14 = vld [vmem:[#allocation11 + $0x18] sm:$0xff] }
  0xd3   :  { %v249_v18 = vpop.f32.mrf.mxu0 }
  0xd4   :  { %v250_v19 = vadd.f32 %v249_v18, %v1816_v36  ;;  %v268_v20 = vpop.f32.mrf.mxu1  ;;  %v1342_v36 = vor.u32 %v1509_v33, %v1339_v35  ;;  %v1250_v18 = vor.u32 %v1488_v16, %v1249_v15  ;;  %v1533_v35 = vld [vmem:[#allocation11 + $0x70] sm:$0xff]  ;;  %v1528_v15 = vld [vmem:[#allocation11 + $0x48] sm:$0xff] }
  0xd5   :  { %v269_v21 = vadd.f32 %v268_v20, %v150_v40  ;;  %v1282_v40 = vor.u32 %v1496_v38, %v1281_v37  ;;  %1007 = vmatpush.bf16.msra.mxu3 %v1533_v35  ;;  %v1521_v16 = vld [vmem:[#allocation11 + $0x10] sm:$0xff] }
  0xd6   :  { %v277_v23 = vmax.f32 %v250_v19, 0.0  ;;  %828 = vmatpush.bf16.msra.mxu1 %v1342_v36  ;;  %v1251_v19 = vld [vmem:[#allocation10 + $0x8] sm:$0xf0] }
  0xd7   :  { %v278_v25 = vmax.f32 %v269_v21, 0.0  ;;  %770 = vmatpush.bf16.msrb.mxu2 %v1282_v40  ;;  %v1254_v20 = vor.u32 %v1487_v17, %v1251_v19  ;;  %v315_v21 = vld [vmem:[%s1841_s4] sm:$0x3]  ;;  %v1527_v17 = vld [vmem:[#allocation11 + $0x40] sm:$0xff] }
  0xd8   :  { %v281_v26 = vpack.c.bf16 %v277_v23, %v275_v22  ;;  %v318_v23 = vperm.slane %v315_v21, 1  ;;  %v1519_v19 = vld [vmem:[#allocation11] sm:$0xff] }
  0xd9   :  { %v282_v27 = vpack.c.bf16 %v278_v25, %v276_v24  ;;  %812 = vmatpush.bf16.msra.mxu0 %v1254_v20  ;;  %1008 = vmatpush.bf16.msra.mxu3 %v1532_v7 }
  0xda   :  { %494 = vmatmul.bf16.gmra.mxu2 %v281_v26  ;;  %532 = vmatmul.bf16.gmra.mxu0 %v281_v26 }
  0xdb   :  { %513 = vmatmul.bf16.gmra.mxu3 %v282_v27  ;;  %551 = vmatmul.bf16.gmra.mxu1 %v282_v27  ;;  %v317_v27 = vperm.slane %v315_v21, 0  ;;  %v601_v21 = vld [vmem:[%s1843_s6] sm:$0x3] }
  0xdc   :  { %829 = vmatpush.bf16.msra.mxu1 %v1334_v48  ;;  %771 = vmatpush.bf16.msrb.mxu2 %v1274_v52 }
  0xdd   :  { %1009 = vmatpush.bf16.msra.mxu3 %v1531_v9 }
  0xe0   :  { %830 = vmatpush.bf16.msra.mxu1 %v1326_v60  ;;  %772 = vmatpush.bf16.msrb.mxu2 %v1266_v0 }
  0xe1   :  { %1010 = vmatpush.bf16.msra.mxu3 %v1530_v11 }
  0xe4   :  { %831 = vmatpush.bf16.msra.mxu1 %v1318_v8  ;;  %773 = vmatpush.bf16.msrb.mxu2 %v1258_v12  ;;  %v1525_v8 = vld [vmem:[#allocation11 + $0x30] sm:$0xff]  ;;  %v1523_v12 = vld [vmem:[#allocation11 + $0x20] sm:$0xff] }
  0xe5   :  { %1011 = vmatpush.bf16.msra.mxu3 %v1529_v13 }
  0xe8   :  { %774 = vmatpush.bf16.msrb.mxu2 %v1250_v18  ;;  %v1520_v18 = vld [vmem:[#allocation11 + $0x8] sm:$0xff] }
  0xe9   :  { %1012 = vmatpush.bf16.msra.mxu3 %v1528_v15 }
  0xec   :  { %987 = vmatpush.bf16.msra.mxu2 %v1526_v30 }
  0xed   :  { %1013 = vmatpush.bf16.msra.mxu3 %v1527_v17 }
  0xf0   :  { %988 = vmatpush.bf16.msra.mxu2 %v1525_v8 }
  0xf4   :  { %989 = vmatpush.bf16.msra.mxu2 %v1524_v10 }
  0xf8   :  { %990 = vmatpush.bf16.msra.mxu2 %v1523_v12 }
  0xfc   :  { %991 = vmatpush.bf16.msra.mxu2 %v1522_v14 }
 0x100   :  { %992 = vmatpush.bf16.msra.mxu2 %v1521_v16 }
 0x104   :  { %993 = vmatpush.bf16.msra.mxu2 %v1520_v18 }
 0x108   :  { %994 = vmatpush.bf16.msra.mxu2 %v1519_v19 }
 0x147   :  { %v528_v22 = vpop.f32.mrf.mxu0 }
 0x148   :  { %v547_v24 = vpop.f32.mrf.mxu1  ;;  %v529_v25 = vadd.f32 %v528_v22, %v318_v23 }
 0x14a   :  { %v548_v32 = vadd.f32 %v547_v24, %v529_v25 }
 0x14c   :  { %v558_v38 = vmax.f32 %v548_v32, 0.0 }
 0x14d   :  { %v490_v26 = vpop.f32.mrf.mxu2 }
 0x14e   :  { %v509_v28 = vpop.f32.mrf.mxu3  ;;  %v491_v36 = vadd.f32 %v490_v26, %v317_v27 }
 0x14f   :  { %v530_v31 = vpop.f32.mrf.mxu0 }
 0x150   :  { %v531_v33 = vadd.f32 %v530_v31, %v318_v23  ;;  %v549_v34 = vpop.f32.mrf.mxu1  ;;  %v510_v41 = vadd.f32 %v509_v28, %v491_v36  ;;  %v603_v28 = vperm.slane %v601_v21, 0 }
 0x152   :  { %v550_v37 = vadd.f32 %v549_v34, %v531_v33  ;;  %v557_v48 = vmax.f32 %v510_v41, 0.0 }
 0x154   :  { %v560_v39 = vmax.f32 %v550_v37, 0.0 }
 0x155   :  { %v492_v40 = vpop.f32.mrf.mxu2 }
 0x156   :  { %v566_v42 = vpack.c.bf16 %v560_v39, %v558_v38  ;;  %v493_v43 = vadd.f32 %v492_v40, %v317_v27  ;;  %v511_v44 = vpop.f32.mrf.mxu3 }
 0x157   :  { %v533_v45 = vpop.f32.mrf.mxu0 }
 0x158   :  { %v512_v46 = vadd.f32 %v511_v44, %v493_v43  ;;  %v552_v47 = vpop.f32.mrf.mxu1  ;;  %794 = vmatmul.bf16.vlgmr.msrb.gmra.mxu3 %v566_v42  ;;  %832 = vmatmul.bf16.vlgmr.msra.gmra.mxu1 %v566_v42  ;;  %v534_v51 = vadd.f32 %v533_v45, %v318_v23 }
 0x15a   :  { %v559_v49 = vmax.f32 %v512_v46, 0.0  ;;  %v553_v55 = vadd.f32 %v552_v47, %v534_v51 }
 0x15c   :  { %v565_v50 = vpack.c.bf16 %v559_v49, %v557_v48  ;;  %v562_v60 = vmax.f32 %v553_v55, 0.0 }
 0x15d   :  { %v495_v52 = vpop.f32.mrf.mxu2 }
 0x15e   :  { %v514_v53 = vpop.f32.mrf.mxu3  ;;  %775 = vmatmul.bf16.vlgmr.msrb.gmra.mxu2 %v565_v50  ;;  %813 = vmatmul.bf16.vlgmr.msra.gmra.mxu0 %v565_v50  ;;  %v496_v58 = vadd.f32 %v495_v52, %v317_v27 }
 0x15f   :  { %v535_v54 = vpop.f32.mrf.mxu0 }
 0x160   :  { %v536_v56 = vadd.f32 %v535_v54, %v318_v23  ;;  %v554_v57 = vpop.f32.mrf.mxu1  ;;  %v515_v63 = vadd.f32 %v514_v53, %v496_v58  ;;  %v604_v23 = vperm.slane %v601_v21, 1 }
 0x162   :  { %v555_v59 = vadd.f32 %v554_v57, %v536_v56  ;;  %v561_v4 = vmax.f32 %v515_v63, 0.0 }
 0x164   :  { %v564_v61 = vmax.f32 %v555_v59, 0.0 }
 0x165   :  { %v497_v62 = vpop.f32.mrf.mxu2 }
 0x166   :  { %v498_v0 = vadd.f32 %v497_v62, %v317_v27  ;;  %v568_v1 = vpack.c.bf16 %v564_v61, %v562_v60  ;;  %v516_v2 = vpop.f32.mrf.mxu3 }
 0x168   :  { %v517_v3 = vadd.f32 %v516_v2, %v498_v0  ;;  %799 = vmatmul.bf16.gmra.mxu3 %v568_v1  ;;  %837 = vmatmul.bf16.gmra.mxu1 %v568_v1 }
 0x16a   :  { %v563_v5 = vmax.f32 %v517_v3, 0.0 }
 0x16c   :  { %v567_v6 = vpack.c.bf16 %v563_v5, %v561_v4  ;;  %v1546_v4 = vld [vmem:[%s1845_s8] ss:$0 sm:$0xff]  ;;  %s1735_s8 = smov [#allocation13]  }
 0x16d   :  { %s1037_s22 = sshll.u32 %s1735_s8, 4  ;;  %s1038_s22 = int_to_ptr.vmem [resolvable:$true] %s1037_s22 }
 0x16e   :  { %780 = vmatmul.bf16.gmra.mxu2 %v567_v6  ;;  %818 = vmatmul.bf16.gmra.mxu0 %v567_v6 }
 0x1d5   :  { %v833_v20 = vpop.f32.mrf.mxu1 }
 0x1db   :  { %v814_v22 = vpop.f32.mrf.mxu0  ;;  %v795_v24 = vpop.f32.mrf.mxu3 }
 0x1dc   :  { %v815_v25 = vadd.f32 %v814_v22, %v604_v23 }
 0x1dd   :  { %v835_v26 = vpop.f32.mrf.mxu1 }
 0x1de   :  { %v834_v30 = vadd.f32 %v833_v20, %v815_v25 }
 0x1e0   :  { %v844_v35 = vmax.f32 %v834_v30, 0.0 }
 0x1e1   :  { %v776_v27 = vpop.f32.mrf.mxu2 }
 0x1e2   :  { %v777_v32 = vadd.f32 %v776_v27, %v603_v28 }
 0x1e3   :  { %v816_v29 = vpop.f32.mrf.mxu0  ;;  %v797_v34 = vpop.f32.mrf.mxu3 }
 0x1e4   :  { %v817_v31 = vadd.f32 %v816_v29, %v604_v23  ;;  %v796_v38 = vadd.f32 %v795_v24, %v777_v32 }
 0x1e5   :  { %v838_v41 = vpop.f32.mrf.mxu1 }
 0x1e6   :  { %v836_v33 = vadd.f32 %v835_v26, %v817_v31  ;;  %v843_v44 = vmax.f32 %v796_v38, 0.0 }
 0x1e8   :  { %v846_v36 = vmax.f32 %v836_v33, 0.0 }
 0x1e9   :  { %v778_v37 = vpop.f32.mrf.mxu2 }
 0x1ea   :  { %v852_v39 = vpack.c.bf16 %v846_v36, %v844_v35  ;;  %v779_v40 = vadd.f32 %v778_v37, %v603_v28 }
 0x1eb   :  { %v819_v42 = vpop.f32.mrf.mxu0  ;;  %v800_v48 = vpop.f32.mrf.mxu3 }
 0x1ec   :  { %v798_v43 = vadd.f32 %v797_v34, %v779_v40  ;;  %1014 = vmatmul.bf16.vlgmr.msra.gmra.mxu3 %v852_v39  ;;  %v820_v47 = vadd.f32 %v819_v42, %v604_v23 }
 0x1ed   :  { %v840_v53 = vpop.f32.mrf.mxu1 }
 0x1ee   :  { %v845_v45 = vmax.f32 %v798_v43, 0.0  ;;  %v839_v51 = vadd.f32 %v838_v41, %v820_v47 }
 0x1f0   :  { %v851_v46 = vpack.c.bf16 %v845_v45, %v843_v44  ;;  %v848_v56 = vmax.f32 %v839_v51, 0.0 }
 0x1f1   :  { %v781_v49 = vpop.f32.mrf.mxu2 }
 0x1f2   :  { %995 = vmatmul.bf16.vlgmr.msra.gmra.mxu2 %v851_v46  ;;  %v782_v54 = vadd.f32 %v781_v49, %v603_v28 }
 0x1f3   :  { %v821_v50 = vpop.f32.mrf.mxu0  ;;  %v802_v62 = vpop.f32.mrf.mxu3 }
 0x1f4   :  { %v822_v52 = vadd.f32 %v821_v50, %v604_v23  ;;  %v801_v59 = vadd.f32 %v800_v48, %v782_v54 }
 0x1f6   :  { %v841_v55 = vadd.f32 %v840_v53, %v822_v52  ;;  %v847_v0 = vmax.f32 %v801_v59, 0.0 }
 0x1f8   :  { %v850_v57 = vmax.f32 %v841_v55, 0.0 }
 0x1f9   :  { %v783_v58 = vpop.f32.mrf.mxu2 }
 0x1fa   :  { %v784_v60 = vadd.f32 %v783_v58, %v603_v28  ;;  %v854_v61 = vpack.c.bf16 %v850_v57, %v848_v56 }
 0x1fc   :  { %v803_v63 = vadd.f32 %v802_v62, %v784_v60  ;;  %1019 = vmatmul.bf16.gmra.mxu3 %v854_v61 }
 0x1fe   :  { %v849_v1 = vmax.f32 %v803_v63, 0.0 }
 0x200   :  { %v853_v2 = vpack.c.bf16 %v849_v1, %v847_v0 }
 0x202   :  { %1000 = vmatmul.bf16.gmra.mxu2 %v853_v2 }
 0x26f   :  { %v1015_v3 = vpop.f32.mrf.mxu3 }
 0x275   :  { %v996_v5 = vpop.f32.mrf.mxu2 }
 0x276   :  { %v997_v6 = vadd.f32 %v1546_v4, %v996_v5 }
 0x277   :  { %v1017_v9 = vpop.f32.mrf.mxu3 }
 0x278   :  { %v1016_v7 = vadd.f32 %v1015_v3, %v997_v6 }
 0x27a   :  { %v1025_v8 = vmax.f32 %v1016_v7, 0.0 }
 0x27c   :  { %1029 = vst [vmem:[#allocation13] sm:$0xff] %v1025_v8 }
 0x27d   :  { %v998_v10 = vpop.f32.mrf.mxu2 }
 0x27e   :  { %v999_v11 = vadd.f32 %v1546_v4, %v998_v10 }
 0x27f   :  { %v1020_v14 = vpop.f32.mrf.mxu3 }
 0x280   :  { %v1018_v12 = vadd.f32 %v1017_v9, %v999_v11 }
 0x282   :  { %v1026_v13 = vmax.f32 %v1018_v12, 0.0 }
 0x284   :  { %1030 = vst [vmem:[#allocation13 + $0x8] sm:$0xff] %v1026_v13 }
 0x285   :  { %v1001_v15 = vpop.f32.mrf.mxu2 }
 0x286   :  { %v1002_v16 = vadd.f32 %v1546_v4, %v1001_v15 }
 0x287   :  { %v1022_v21 = vpop.f32.mrf.mxu3 }
 0x288   :  { %v1021_v17 = vadd.f32 %v1020_v14, %v1002_v16 }
 0x28a   :  { %v1027_v18 = vmax.f32 %v1021_v17, 0.0 }
 0x28c   :  { %1031 = vst [vmem:[#allocation13 + $0x10] sm:$0xff] %v1027_v18 }
 0x28d   :  { %v1003_v19 = vpop.f32.mrf.mxu2 }
 0x28e   :  { %v1004_v20 = vadd.f32 %v1546_v4, %v1003_v19 }
 0x290   :  { %v1023_v22 = vadd.f32 %v1022_v21, %v1004_v20 }
 0x292   :  { %v1028_v23 = vmax.f32 %v1023_v22, 0.0 }
 0x294   :  { %1032 = vst [vmem:[#allocation13 + $0x18] sm:$0xff] %v1028_v23 }
 0x295   :  { %1045 = dma.vmem_to_hbm [thread:$0]  %s1038_s22, 512, %s1040_s23, [#allocation4], %s1726_s17, %s1726_s17, %s1727_s18  }
 0x296   :  { %1723 = dma.done.wait [#allocation4], 512  }
 0x297   :  { %1724 = vsyncadd [#allocation4], 4294966784 }
 0x298   :  { %1050 = vsyncpa [#allocation3], 1 }
 0x299   :  { %1051 = vsyncpa [#allocation6], 1 }
 0x29a   :  { %1052 = vsyncpa [#allocation9], 1 }
 0x29b   :  { %1053 = vsyncpa [#allocation12], 1 }
 0x29c   :  { %1054 = vsyncpa [#allocation4], 1 }

</bundles_post_ra>
